<compile_context>
chip_gen: v7x
topology: tpu7x:2x2x1
jax: 0.10.0
libtpu: 0.0.40
codegen_flags: <defaults>
</compile_context>

<pallas_src>
import functools

import jax
import jax.numpy as jnp
from jax.experimental import pallas as pl
from jax.experimental.pallas import tpu as pltpu

_PITCHES = 88
_LANE = 128


def _merge_kernel(x_ref, c_ref, w_ref, b_ref, o_ref, *, C, P, F, compute_dtype):
    # x_ref: (1, C, tt, F)    c_ref: (1, tt, K)
    # w_ref: (K, P*128) bf16  b_ref: (1, P*128) f32
    # o_ref: (1, C+P, tt, F)
    #
    # 1) pass-through of the original x channels (replaces th.cat's copy of x).
    o_ref[0, :C, :, :] = x_ref[0].astype(o_ref.dtype)

    # 2) projection: one lane-dense MXU matmul over all pitch-channels at once,
    #    bf16 operands, f32 accumulation, f32 bias add on the VPU.
    a = c_ref[0].astype(compute_dtype)                                 # (tt, K)
    acc = jnp.dot(a, w_ref[...], preferred_element_type=jnp.float32)   # (tt, P*128)
    acc = acc + b_ref[...]

    # 3) scatter each 128-wide column block (== one pitch-channel, already in
    #    permuted order and zero-padded past pitch 88) straight into the final
    #    layout.  Replaces reshape + permute + F.pad + cat.  The slice start is
    #    a static multiple of 128, so these are vreg-aligned copies.
    for n in range(P):
        o_ref[0, C + n, :, :] = acc[:, n * _LANE:n * _LANE + F].astype(o_ref.dtype)


def prepare_merge_context_params(w_torch, bias, n_per_pitch,
                                 compute_dtype=jnp.bfloat16):
    """One-time parameter prep (host/init side).

    w_torch: (88*n_per_pitch, 88*c_dim)  torch nn.Linear weight (out, in)
    bias:    (88*n_per_pitch,)
    Returns:
      w_perm: (88*c_dim, n_per_pitch*128) in compute_dtype, columns permuted so
              column n*128 + pitch holds original out-feature pitch*n_per_pitch + n,
              zero-padded from 88 -> 128 pitches (lane dense).
      b_perm: (1, n_per_pitch*128) f32, same permutation/padding.
    """
    P = int(n_per_pitch)
    out_f, K = w_torch.shape
    assert out_f == _PITCHES * P, "weight rows must be 88 * n_per_pitch"

    w3 = w_torch.reshape(_PITCHES, P, K).transpose(1, 0, 2)        # (P, 88, K)
    w3 = jnp.pad(w3, ((0, 0), (0, _LANE - _PITCHES), (0, 0)))      # (P, 128, K)
    w_perm = w3.transpose(2, 0, 1).reshape(K, P * _LANE)           # (K, P*128)

    b3 = bias.reshape(_PITCHES, P).T                               # (P, 88)
    b3 = jnp.pad(b3, ((0, 0), (0, _LANE - _PITCHES)))              # (P, 128)
    b_perm = b3.reshape(1, P * _LANE).astype(jnp.float32)

    return w_perm.astype(compute_dtype), b_perm


def _pick_t_tile(T, C, P, F, K, x_itemsize, c_itemsize,
                 max_tt=512, vmem_budget=10 * 1024 * 1024):
    """Largest row tile that (a) divides T and is sublane-aligned when < T,
    (b) keeps the double-buffered per-step working set under a conservative
    VMEM budget (safe under the v5e 16 MiB default scoped limit)."""
    # Bytes per time-frame row across all double-buffered per-step blocks.
    per_row = 2 * (C * F * x_itemsize          # x block
                   + K * c_itemsize            # c block
                   + (C + P) * F * x_itemsize  # out block
                   + P * _LANE * 4)            # f32 matmul result / bias row
    weight_bytes = 2 * (K * P * _LANE * 2 + P * _LANE * 4)  # resident w + b
    budget_rows = max(8, (vmem_budget - weight_bytes) // max(per_row, 1))
    cap = min(max_tt, int(budget_rows))

    if T <= cap:
        return T
    cap -= cap % 8                                # sublane-aligned cap
    for tt in range(cap, 7, -8):
        if T % tt == 0:
            return tt
    return T  # fall back: whole T as a single block


def merge_context_net_forward(x, c, w_perm, b_perm, n_per_pitch,
                              compute_dtype=jnp.bfloat16):
    """
    x:      (B, C, T, F) with F in {88, 99}
    c:      (B, T, 88, c_dim)
    w_perm: (88*c_dim, n_per_pitch*128)   from prepare_merge_context_params
    b_perm: (1, n_per_pitch*128)
    returns (B, C + n_per_pitch, T, F)
    """
    B, C, T, F = x.shape
    assert F in (_PITCHES, 99), "x last dim must be 88 or 99"
    c_dim = c.shape[3]
    K = _PITCHES * c_dim
    P = int(n_per_pitch)
    Np = P * _LANE
    assert w_perm.shape == (K, Np) and b_perm.shape == (1, Np)

    c_flat = c.reshape(B, T, K)          # contiguous merge of last two dims (free)
    tt = _pick_t_tile(T, C, P, F, K, x.dtype.itemsize, c_flat.dtype.itemsize)
    nT = T // tt

    kernel = functools.partial(_merge_kernel, C=C, P=P, F=F,
                               compute_dtype=compute_dtype)

    itemsize = x.dtype.itemsize
    flops = 2 * B * T * K * Np
    bytes_accessed = (x.size * itemsize                       # x in
                      + c_flat.size * c_flat.dtype.itemsize   # c in
                      + w_perm.size * w_perm.dtype.itemsize   # weight
                      + b_perm.size * 4                       # bias
                      + B * (C + P) * T * F * itemsize)       # out

    return pl.pallas_call(
        kernel,
        out_shape=jax.ShapeDtypeStruct((B, C + P, T, F), x.dtype),
        grid_spec=pltpu.PrefetchScalarGridSpec(
            num_scalar_prefetch=0,
            grid=(B, nT),
            in_specs=[
                pl.BlockSpec((1, C, tt, F), lambda b, t: (b, 0, t, 0)),   # x slab
                pl.BlockSpec((1, tt, K), lambda b, t: (b, t, 0)),         # c rows
                pl.BlockSpec((K, Np), lambda b, t: (0, 0)),               # weight (resident)
                pl.BlockSpec((1, Np), lambda b, t: (0, 0)),               # bias (resident)
            ],
            out_specs=pl.BlockSpec((1, C + P, tt, F), lambda b, t: (b, 0, t, 0)),
        ),
        compiler_params=pltpu.CompilerParams(
            dimension_semantics=("parallel", "parallel")),
        cost_estimate=pl.CostEstimate(flops=flops, transcendentals=0,
                                      bytes_accessed=bytes_accessed),
    )(x, c_flat, w_perm, b_perm)


if __name__ == "__main__":
    # Small shapes consistent with the module: B=2, C=4, T=8, F=99, c_dim=4, n_per_pitch=2.
    B, C, T, F_dim = 2, 4, 8, 99
    c_dim, n_per_pitch = 4, 2

    key = jax.random.PRNGKey(0)
    kx, kc, kw, kb = jax.random.split(key, 4)

    x = jax.random.normal(kx, (B, C, T, F_dim), dtype=jnp.float32)
    c = jax.random.normal(kc, (B, T, _PITCHES, c_dim), dtype=jnp.float32)

    # torch nn.Linear-style parameters: weight (out, in), bias (out,).
    in_f = c_dim * _PITCHES
    out_f = n_per_pitch * _PITCHES
    bound = 1.0 / jnp.sqrt(in_f)
    w_torch = jax.random.uniform(kw, (out_f, in_f), minval=-bound, maxval=bound,
                                 dtype=jnp.float32)
    b = jax.random.uniform(kb, (out_f,), minval=-bound, maxval=bound,
                           dtype=jnp.float32)

    w_perm, b_perm = prepare_merge_context_params(w_torch, b, n_per_pitch)

    out = merge_context_net_forward(x, c, w_perm, b_perm, n_per_pitch)
    out = jax.block_until_ready(out)

    # Reference in plain fp32 JAX (same math as the torch forward).
    c_flat = c.reshape(B * T, _PITCHES * c_dim)
    ref_proj = (c_flat @ w_torch.T + b).reshape(B, T, _PITCHES, n_per_pitch)
    ref_proj = ref_proj.transpose(0, 3, 1, 2)
    if F_dim == 99:
        ref_proj = jnp.pad(ref_proj, ((0, 0), (0, 0), (0, 0), (0, 11)))
    ref = jnp.concatenate((x, ref_proj), axis=1)

    assert out.shape == (B, C + n_per_pitch, T, F_dim)
    # bf16 MXU operands with f32 accumulation -> loose-but-meaningful tolerance.
    assert jnp.allclose(out, ref, atol=2e-2, rtol=2e-2), float(jnp.max(jnp.abs(out - ref)))
    print("KERNEL_OK")
</pallas_src>

<mosaic_0001>
module attributes {stable_mosaic.version = 11 : i64} {
  func.func @_merge_kernel(%arg0: i32, %arg1: i32, %arg2: memref<1x4x8x99xf32, #tpu.memory_space<vmem>>, %arg3: memref<1x8x352xf32, #tpu.memory_space<vmem>>, %arg4: memref<352x256xbf16, #tpu.memory_space<vmem>>, %arg5: memref<1x256xf32, #tpu.memory_space<vmem>>, %arg6: memref<1x6x8x99xf32, #tpu.memory_space<vmem>>) attributes {dimension_semantics = [#tpu.dimension_semantics<parallel>, #tpu.dimension_semantics<parallel>], iteration_bounds = array<i64: 2, 1>, scalar_prefetch = 0 : i64, scratch_operands = 0 : i64, tpu.core_type = #tpu.core_type<tc>, window_params = [{transform_indices = @transform_0, window_bounds = array<i64: 1, 4, 8, 99>}, {transform_indices = @transform_1, window_bounds = array<i64: 1, 8, 352>}, {pipeline_mode = #tpu.pipeline_mode<synchronous>, transform_indices = @transform_2, window_bounds = array<i64: 352, 256>}, {pipeline_mode = #tpu.pipeline_mode<synchronous>, transform_indices = @transform_3, window_bounds = array<i64: 1, 256>}, {transform_indices = @transform_4, window_bounds = array<i64: 1, 6, 8, 99>}]} {
    %c0 = arith.constant 0 : index
    %c0_0 = arith.constant 0 : index
    %c0_1 = arith.constant 0 : index
    %c0_2 = arith.constant 0 : index
    %0 = vector.load %arg2[%c0, %c0_0, %c0_1, %c0_2] : memref<1x4x8x99xf32, #tpu.memory_space<vmem>>, vector<1x4x8x99xf32>
    %1 = vector.shape_cast %0 : vector<1x4x8x99xf32> to vector<4x8x99xf32>
    %c0_3 = arith.constant 0 : index
    %c0_4 = arith.constant 0 : index
    %c0_5 = arith.constant 0 : index
    %c0_6 = arith.constant 0 : index
    %2 = vector.load %arg6[%c0_3, %c0_4, %c0_5, %c0_6] : memref<1x6x8x99xf32, #tpu.memory_space<vmem>>, vector<1x4x8x99xf32>
    %3 = vector.shape_cast %2 : vector<1x4x8x99xf32> to vector<4x8x99xf32>
    %4 = vector.shape_cast %1 : vector<4x8x99xf32> to vector<1x4x8x99xf32>
    tpu.vector_store %arg6[%c0_3, %c0_4, %c0_5, %c0_6], %4 {strides = array<i32>} : memref<1x6x8x99xf32, #tpu.memory_space<vmem>>, vector<1x4x8x99xf32>,
    %c0_7 = arith.constant 0 : index
    %c0_8 = arith.constant 0 : index
    %c0_9 = arith.constant 0 : index
    %5 = vector.load %arg3[%c0_7, %c0_8, %c0_9] : memref<1x8x352xf32, #tpu.memory_space<vmem>>, vector<1x8x352xf32>
    %6 = vector.shape_cast %5 : vector<1x8x352xf32> to vector<8x352xf32>
    %7 = arith.truncf %6 : vector<8x352xf32> to vector<8x352xbf16>
    %c0_10 = arith.constant 0 : index
    %c0_11 = arith.constant 0 : index
    %8 = vector.load %arg4[%c0_10, %c0_11] : memref<352x256xbf16, #tpu.memory_space<vmem>>, vector<352x256xbf16>
    %cst = arith.constant dense<0.000000e+00> : vector<8x256xf32>
    %9 = tpu.matmul %7, %8, %cst {dimension_numbers = #tpu.dot_dimension_numbers<[1], [0], [0], [1], [0, 0, 1, 1], [], []>} : vector<8x352xbf16>, vector<352x256xbf16>, vector<8x256xf32> -> vector<8x256xf32>
    %c0_12 = arith.constant 0 : index
    %c0_13 = arith.constant 0 : index
    %10 = vector.load %arg5[%c0_12, %c0_13] : memref<1x256xf32, #tpu.memory_space<vmem>>, vector<1x256xf32>
    %11 = vector.broadcast %10 : vector<1x256xf32> to vector<8x256xf32>
    %12 = arith.addf %9, %11 : vector<8x256xf32>
    %13 = vector.extract_strided_slice %12 {offsets = [0, 0], sizes = [8, 99], strides = [1, 1]} : vector<8x256xf32> to vector<8x99xf32>
    %c0_14 = arith.constant 0 : index
    %c4 = arith.constant 4 : index
    %c0_15 = arith.constant 0 : index
    %c0_16 = arith.constant 0 : index
    %14 = vector.load %arg6[%c0_14, %c4, %c0_15, %c0_16] : memref<1x6x8x99xf32, #tpu.memory_space<vmem>>, vector<1x1x8x99xf32>
    %15 = vector.shape_cast %14 : vector<1x1x8x99xf32> to vector<8x99xf32>
    %16 = vector.shape_cast %13 : vector<8x99xf32> to vector<1x1x8x99xf32>
    tpu.vector_store %arg6[%c0_14, %c4, %c0_15, %c0_16], %16 {strides = array<i32>} : memref<1x6x8x99xf32, #tpu.memory_space<vmem>>, vector<1x1x8x99xf32>,
    %17 = vector.extract_strided_slice %12 {offsets = [0, 128], sizes = [8, 99], strides = [1, 1]} : vector<8x256xf32> to vector<8x99xf32>
    %c0_17 = arith.constant 0 : index
    %c5 = arith.constant 5 : index
    %c0_18 = arith.constant 0 : index
    %c0_19 = arith.constant 0 : index
    %18 = vector.load %arg6[%c0_17, %c5, %c0_18, %c0_19] : memref<1x6x8x99xf32, #tpu.memory_space<vmem>>, vector<1x1x8x99xf32>
    %19 = vector.shape_cast %18 : vector<1x1x8x99xf32> to vector<8x99xf32>
    %20 = vector.shape_cast %17 : vector<8x99xf32> to vector<1x1x8x99xf32>
    tpu.vector_store %arg6[%c0_17, %c5, %c0_18, %c0_19], %20 {strides = array<i32>} : memref<1x6x8x99xf32, #tpu.memory_space<vmem>>, vector<1x1x8x99xf32>,
    return
  }
  func.func @transform_0(%arg0: i32, %arg1: i32) -> (i32, i32, i32, i32) {
    %c0_i32 = arith.constant 0 : i32
    %c0_i32_0 = arith.constant 0 : i32
    %c0_i32_1 = arith.constant 0 : i32
    return %arg0, %c0_i32, %arg1, %c0_i32_0 : i32, i32, i32, i32
  }
  func.func @transform_1(%arg0: i32, %arg1: i32) -> (i32, i32, i32) {
    %c0_i32 = arith.constant 0 : i32
    %c0_i32_0 = arith.constant 0 : i32
    return %arg0, %arg1, %c0_i32 : i32, i32, i32
  }
  func.func @transform_2(%arg0: i32, %arg1: i32) -> (i32, i32) {
    %c0_i32 = arith.constant 0 : i32
    %c0_i32_0 = arith.constant 0 : i32
    %c0_i32_1 = arith.constant 0 : i32
    return %c0_i32, %c0_i32_0 : i32, i32
  }
  func.func @transform_3(%arg0: i32, %arg1: i32) -> (i32, i32) {
    %c0_i32 = arith.constant 0 : i32
    %c0_i32_0 = arith.constant 0 : i32
    %c0_i32_1 = arith.constant 0 : i32
    return %c0_i32, %c0_i32_0 : i32, i32
  }
  func.func @transform_4(%arg0: i32, %arg1: i32) -> (i32, i32, i32, i32) {
    %c0_i32 = arith.constant 0 : i32
    %c0_i32_0 = arith.constant 0 : i32
    %c0_i32_1 = arith.constant 0 : i32
    return %arg0, %c0_i32, %arg1, %c0_i32_0 : i32, i32, i32, i32
  }
}

</mosaic_0001>

<bundles_post_ra>
// kernel: tpu_custom_call.1
= control target key start
LH: loop header
LB: loop body
LE: loop exit
PB: predicated region body
PF: predicated region fallthrough
CT: control target
= control target key end

     0   :  { %s1523_s0 = inlined_call_operand.hbm [shape: f32[2,4,8,99], index: 0, kind: input, shape index: {}]   ;;  %s1524_s1 = inlined_call_operand.hbm [shape: f32[2,8,352], index: 1, kind: input, shape index: {}]   ;;  %s1525_s2 = inlined_call_operand.hbm [shape: bf16[352,256], index: 2, kind: input, shape index: {}]   ;;  %s1526_s3 = inlined_call_operand.vmem [shape: f32[1,256], index: 3, kind: input, shape index: {}]   ;;  %s1527_s4 = inlined_call_operand.hbm [shape: f32[2,6,8,99], index: 4, kind: output, shape index: {}]  }
   0x1   :  { %1535 = sst [smem:[#allocation15_spill]] %s1523_s0 }
   0x2   :  { %1536 = sst [smem:[#allocation16_spill]] %s1525_s2 }
   0x3   :  { %9 = vsyncpa [#allocation3], 0 }
   0x4   :  { %11 = vsyncpa [#allocation3 + $0x1], 0 }
   0x5   :  { %12 = vsyncpa [#allocation6], 0 }
   0x6   :  { %14 = vsyncpa [#allocation6 + $0x1], 0 }
   0x7   :  { %15 = vsyncpa [#allocation4], 0 }
   0x8   :  { %17 = vsyncpa [#allocation4 + $0x1], 0  ;;  %s1241_s15 = smov 0   ;;  %s1243_s16 = smov 0  }
   0x9   :  { %s1245_s17 = smov 0   ;;  %s1247_s18 = smov 0  }
   0xa   :  { %s1249_s19 = smov 0   ;;  %s1251_s20 = smov 0  }
   0xb LB: > { %s1272_s21 = sadd.s32 4294967295, %s1205_s20   ;;  %s807_s22 = sadd.s32 4294967294, %s1205_s20   ;;  %s1205_s20 = sphi %s1251_s20, %s23_s20   ;;  %s1201_s19 = sphi %s1249_s19, %s1565_s19   ;;  %s1197_s18 = sphi %s1247_s18, %s1564_s18   ;;  %s1193_s17 = sphi %s1245_s17, %s1563_s17   ;;  %s1189_s16 = sphi %s1243_s16, %s1562_s16   ;;  %s1185_s15 = sphi %s1241_s15, %s1561_s15  }
   0xc   : > { %p57_p0 = scmp.ne.s32.totalorder %s1189_s16, %s1185_s15  ;;  %p1528_p1 = scmp.eq.s32.totalorder %s1272_s21, 0 }
   0xd   : > { %p159_p3 = scmp.eq.s32.totalorder %s807_s22, 1  ;;  %p808_p5 = scmp.ge.s32.totalorder %s1205_s20, 1 }
   0xe   : > { %p1281_p4 = por %p1528_p1, %p57_p0  ;;  %p166_p7 = scmp.lt.s32.totalorder %s1205_s20, 3 }
   0xf   : > { %p1286_p6 = por %p159_p3, %p57_p0  ;;  %s1207_s26 = smov [#allocation7]  }
  0x10   : > { %s1537_s23 = scalar_select %p1281_p4, 1, 0 }
  0x11   : > { %s1538_s24 = scalar_select %p1286_p6, 1, 0 }
  0x12   : > { %p1291_p8 = pnand %p808_p5, %p166_p7  ;;  %s178_s27 = sshll.u32 %s1207_s26, 4  ;;  %s179_s27 = int_to_ptr.vmem [resolvable:$true] %s178_s27 }
  0x13   : > { %s35_s29 = sadd.s32 1, %s1201_s19  ;;  %s1541_s2 = sld [smem:[#allocation16_spill]] }
  0x14   : > { %s1539_s25 = scalar_select %p1291_p8, 1, 0 }
  0x15   : > { %p888_p9 = pneg %p1291_p8 }
  0x17   : > { %p1300_p11 = pnand %p888_p9, %p1528_p1 }
  0x19   : > { %s1027_s6 = scalar_lea.hbm %s1541_s2, 5632  ;;  %p1029_p13 = pneg %p1300_p11 }
  0x1a   : > { %p1028_p12 = scmp.ne.s32.totalorder %s1541_s2, %s1027_s6  ;;  %p1034_p5 = scmp.lt.u32.totalorder %s1027_s6, %s1541_s2 }
  0x1c   : > { %p1030_p0 = pnand %p1029_p13, %p1028_p12 }
  0x1e   : > { %p1031_p3 = pneg %p1030_p0 }
  0x20   : > { %p1036_p7 = pnand %p1034_p5, %p1031_p3 }
  0x22   : > { %1039 = shalt.err (!%p1036_p7)
}
  0x23   : > { %s1040_s11 = scalar_lea.vmem %s179_s27, 5632  ;;  %p1048_p2 = scmp.lt.s32.totalorder %s179_s27, %s179_s27 }
  0x24   : > { %p1041_p9 = scmp.ne.s32.totalorder %s179_s27, %s1040_s11  ;;  %p1049_p6 = scmp.lt.s32.totalorder %s1040_s11, %s1040_s11 }
  0x26   : > { %p1043_p10 = pnand %p1041_p9, %p1029_p13  ;;  %p1050_p4 = por %p1049_p6, %p1048_p2 }
  0x28   : > { %p1044_p1 = pneg %p1043_p10 }
  0x2a   : > { %p1051_p8 = pnand %p1050_p4, %p1044_p1 }
  0x2c   : > { %1054 = shalt.err (!%p1051_p8)
}
  0x2d   : > { %s1531_s12 = smov 128   ;;  %s1532_s13 = smov 8  }
  0x2e   : > { %891 = dma.hbm_to_vmem [thread:$0]  (!%p1300_p11), %s1541_s2, 5632, %s179_s27, [#allocation6], %s1531_s12, %s1531_s12, %s1532_s13  }
  0x2f   : > { %p37_p1 = scmp.ge.s32.totalorder %s35_s29, 2  ;;  %s44_s26 = sadd.s32 1, %s1193_s17 }
  0x30   : > { %p51_p2 = scmp.ne.s32.totalorder %s1193_s17, %s1189_s16  ;;  %p52_p4 = scmp.eq.s32.totalorder %s1205_s20, 0 }
  0x31   : > { %s1567_s29 = smov (%p37_p1, %s35_s29), 0  ;;  %p1544_p8 = scmp.eq.s32.totalorder %s1272_s21, 1 }
  0x32   : > { %1542 = sst [smem:[#allocation13_spill]] %s1567_s29  ;;  %p1330_p6 = por %p52_p4, %p51_p2 }
  0x33   : > { %p1336_p10 = por %p1544_p8, %p51_p2  ;;  %s39_s5 = ssub.s32 %s1201_s19, %s1567_s29 }
  0x34   : > { %p904_p11 = scmp.lt.s32.totalorder %s1205_s20, 2  ;;  %p42_p12 = scmp.eq.s32.totalorder %s39_s5, 0 }
  0x35   : > { %s1545_s28 = scalar_select %p1336_p10, 1, 0 }
  0x36   : > { %s1344_s27 = sand.u32 1, %s1193_s17   ;;  %s868_s8 = sshll.u32 %s1201_s19, 9 }
  0x37   : > { %s811_s6 = sshll.u32 %s1344_s27, 5  ;;  %s1547_s0 = sld [smem:[#allocation15_spill]] }
  0x38   : > { %s1348_s7 = scalar_select %p42_p12, %s1193_s17, %s44_s26  }
  0x39   : > { %s199_s14 = scalar_lea.vmem [#allocation2], %s811_s6  ;;  %p1360_p13 = pnand %p904_p11, %p1330_p6 }
  0x3a   : > { %1546 = sst [smem:[#allocation14_spill]] %s1348_s7  ;;  %s207_s22 = sshll.u32 %s199_s14, 4  ;;  %s1356_s22 = int_to_ptr.vmem [resolvable:$true] %s207_s22 }
  0x3b   : > { %s873_s12 = smul.u32 24, %s1344_s27  ;;  %s196_s9 = scalar_lea.sflag [#allocation3], %s1344_s27 }
  0x3c   : > { %p1057_p3 = pneg %p1360_p13 }
  0x3d   : > { %s1354_s11 = scalar_lea.hbm %s1547_s0, %s868_s8  ;;  %s1060_s30 = scalar_lea.hbm %s1547_s0, 1024 }
  0x3e   : > { %s1055_s8 = scalar_lea.hbm %s1354_s11, 512  ;;  %p1061_p9 = scmp.lt.u32.totalorder %s1354_s11, %s1547_s0 }
  0x3f   : > { %p1056_p0 = scmp.ne.s32.totalorder %s1354_s11, %s1055_s8  ;;  %p1062_p1 = scmp.lt.u32.totalorder %s1060_s30, %s1055_s8 }
  0x40   : > { %p1064_p4 = scmp.lt.u32.totalorder %s1055_s8, %s1354_s11 }
  0x41   : > { %p1058_p5 = pnand %p1057_p3, %p1056_p0  ;;  %p1063_p2 = por %p1062_p1, %p1061_p9 }
  0x43   : > { %p1059_p7 = pneg %p1058_p5  ;;  %p1065_p6 = por %p1064_p4, %p1063_p2 }
  0x45   : > { %p1066_p8 = pnand %p1065_p6, %p1059_p7 }
  0x47   : > { %1069 = shalt.err (!%p1066_p8)
}
  0x48   : > { %s1070_s26 = scalar_lea.vmem %s1356_s22, 512  ;;  %s1210_s6 = smov [#allocation2]  }
  0x49   : > { %p1071_p11 = scmp.ne.s32.totalorder %s1356_s22, %s1070_s26  ;;  %s1075_s10 = sshll.u32 %s1210_s6, 4  ;;  %s1076_s10 = int_to_ptr.vmem [resolvable:$false] %s1075_s10 }
  0x4a   : > { %s1077_s13 = scalar_lea.vmem %s1076_s10, 1024  ;;  %p1078_p5 = scmp.lt.s32.totalorder %s1356_s22, %s1076_s10 }
  0x4b   : > { %p1073_p12 = pnand %p1071_p11, %p1057_p3  ;;  %p1079_p9 = scmp.lt.s32.totalorder %s1077_s13, %s1070_s26 }
  0x4d   : > { %p1074_p0 = pneg %p1073_p12  ;;  %p1080_p1 = por %p1079_p9, %p1078_p5 }
  0x4f   : > { %p1081_p2 = pnand %p1080_p1, %p1074_p0 }
  0x51   : > { %1084 = shalt.err (!%p1081_p2)
}
  0x52   : > { %s1549_s8 = smov 8   ;;  %s1550_s30 = smov 128  }
  0x53   : > { %895 = dma.hbm_to_vmem [thread:$0]  (!%p1360_p13), %s1354_s11, 512, %s1356_s22, %s196_s9, %s1550_s30, %s1550_s30, %s1549_s8  }
  0x54   : > { %s874_s14 = smul.u32 384, %s1201_s19  ;;  %s221_s26 = scalar_lea.vmem [#allocation5], %s873_s12 }
  0x55   : > { %s231_s6 = sshll.u32 %s221_s26, 4  ;;  %s1551_s2 = sand.u32 1, %s1205_s20   ;;  %s232_s6 = int_to_ptr.vmem [resolvable:$true] %s231_s6 }
  0x56   : > { %s1403_s0 = scalar_lea.hbm %s1524_s1, %s874_s14  ;;  %s218_s29 = scalar_lea.sflag [#allocation6], %s1551_s2 }
  0x57   : > { %s1085_s7 = scalar_lea.hbm %s1403_s0, 384  ;;  %s1090_s11 = scalar_lea.hbm %s1524_s1, 768 }
  0x58   : > { %p1086_p7 = scmp.ne.s32.totalorder %s1403_s0, %s1085_s7  ;;  %p1091_p8 = scmp.lt.u32.totalorder %s1403_s0, %s1524_s1 }
  0x59   : > { %p1092_p11 = scmp.lt.u32.totalorder %s1090_s11, %s1085_s7  ;;  %p1094_p0 = scmp.lt.u32.totalorder %s1085_s7, %s1403_s0 }
  0x5a   : > { %p1088_p4 = pnand %p1086_p7, %p1057_p3 }
  0x5b   : > { %p1093_p12 = por %p1092_p11, %p1091_p8 }
  0x5c   : > { %p1089_p6 = pneg %p1088_p4 }
  0x5d   : > { %p1095_p5 = por %p1094_p0, %p1093_p12 }
  0x5f   : > { %p1096_p9 = pnand %p1095_p5, %p1089_p6 }
  0x61   : > { %1099 = shalt.err (!%p1096_p9)
}
  0x62   : > { %s1100_s2 = scalar_lea.vmem %s232_s6, 384  ;;  %s1211_s8 = smov [#allocation5]  }
  0x63   : > { %p1101_p1 = scmp.ne.s32.totalorder %s232_s6, %s1100_s2  ;;  %s1105_s30 = sshll.u32 %s1211_s8, 4  ;;  %s1106_s30 = int_to_ptr.vmem [resolvable:$false] %s1105_s30 }
  0x64   : > { %s1107_s14 = scalar_lea.vmem %s1106_s30, 768  ;;  %p1108_p4 = scmp.lt.s32.totalorder %s232_s6, %s1106_s30 }
  0x65   : > { %p1103_p2 = pnand %p1101_p1, %p1057_p3  ;;  %p1109_p10 = scmp.lt.s32.totalorder %s1107_s14, %s1100_s2 }
  0x67   : > { %p1104_p7 = pneg %p1103_p2  ;;  %p1110_p8 = por %p1109_p10, %p1108_p4 }
  0x69   : > { %p1111_p11 = pnand %p1110_p8, %p1104_p7 }
  0x6b   : > { %1114 = shalt.err (!%p1111_p11)
}
  0x6c   : > { %898 = dma.hbm_to_vmem [thread:$0]  (!%p1360_p13), %s1403_s0, 384, %s232_s6, %s218_s29  }
  0x6d   : > { %p1552_p6 = scmp.ne.s32.totalorder %s1539_s25, 0 }
  0x6e   : > { %s1429_s7 = sand.u32 (!%p1552_p6), 1, %s1189_s16   ;;  %p1553_p10 = scmp.ne.s32.totalorder (!%p1552_p6), %s1537_s23, 0 }
  0x6f   : > { %240 = sbr.rel (%p1552_p6) target bundleno = 423 (0x1a7), region = 36  ;;  %s816_s26 = sshll.u32 (!%p1552_p6), %s1429_s7, 5 }
  0x70   : > { %s243_s10 = scalar_lea.sflag (!%p1552_p6), [#allocation3], %s1429_s7  ;;  %s1433_s13 = scalar_lea.vmem (!%p1552_p6), [#allocation2], %s816_s26 }
  0x76   : > { %1168 = dma.done.wait (%p1553_p10), %s243_s10, 512  }
  0x77   : > { %1170 = vsyncadd (%p1553_p10), %s243_s10, 4294966784  ;;  %s251_s0 = sand.u32 1, %s1272_s21   ;;  %s875_s25 = smul.u32 24, %s1429_s7 }
  0x78   : > { %s252_s29 = scalar_lea.sflag [#allocation6], %s251_s0 }
  0x79   : > { %s1441_s5 = scalar_lea.vmem [#allocation5], %s875_s25 }
  0x7a   : > { %1172 = dma.done.wait (%p1553_p10), %s252_s29, 384  }
  0x7b   : > { %1174 = vsyncadd (%p1553_p10), %s252_s29, 4294966912  ;;  %p1554_p13 = scmp.eq.s32.totalorder %s1272_s21, 0 }
  0x7d   : > { %1176 = dma.done.wait (%p1554_p13), [#allocation6], 5632   ;;  %p1555_p3 = pmov %p1554_p13 }
  0x7e   : > { %v1212_v0 = vmov 0   ;;  %v961_v1 = vld [vmem:[#allocation7 + $0x4] ss:$8 sps:$4 sm:$0xff]   ;;  %v963_v2 = vld [vmem:[#allocation7] ss:$8 sps:$4 sm:$0xff]   ;;  %v300_v28 = vld [vmem:[%s1441_s5 + $0x8] sm:$0xff]  ;;  %v351_v59 = vlaneseq }
  0x7f   : > { %1178 = vsyncadd (%p1555_p3), [#allocation6], 4294961664  ;;  %658 = vmatprep.mubr.bf16.mxu0 %v1212_v0  ;;  %585 = vmatprep.subr.bf16.mxu1 %v961_v1  ;;  %v964_v3 = vld [vmem:[#allocation7 + $0x14] ss:$8 sps:$4 sm:$0xff]   ;;  %v966_v4 = vld [vmem:[#allocation7 + $0x10] ss:$8 sps:$4 sm:$0xff]   ;;  %v303_v30 = vpack.c.bf16 %v300_v28, %v300_v28 }
  0x80   : > { %586 = vmatpush1.bf16.msra.mxu1 %v963_v2  ;;  %v967_v5 = vld [vmem:[#allocation7 + $0x24] ss:$8 sps:$4 sm:$0xff]   ;;  %v969_v6 = vld [vmem:[#allocation7 + $0x20] ss:$8 sps:$4 sm:$0xff]   ;;  %v970_v7 = vld [vmem:[#allocation7 + $0x34] ss:$8 sps:$4 sm:$0xff]  }
  0x81   : > { %587 = vmatprep.subr.bf16.mxu1 %v964_v3  ;;  %v972_v8 = vld [vmem:[#allocation7 + $0x30] ss:$8 sps:$4 sm:$0xff]   ;;  %v973_v9 = vld [vmem:[#allocation7 + $0x44] ss:$8 sps:$4 sm:$0xff]   ;;  %v975_v11 = vld [vmem:[#allocation7 + $0x40] ss:$8 sps:$4 sm:$0xff]   ;;  %617 = vmatprep.mubr.bf16.mxu1 %v303_v30 }
  0x82   : > { %v991_v10 = vld [vmem:[#allocation7 + $0x104] ss:$8 sps:$4 sm:$0xff]   ;;  %v976_v12 = vld [vmem:[#allocation7 + $0x54] ss:$8 sps:$4 sm:$0xff]   ;;  %v995_v13 = vld [vmem:[#allocation7 + $0x100] ss:$8 sps:$4 sm:$0xff]  }
  0x83   : > { %626 = vmatprep.subr.bf16.mxu0 %v991_v10  ;;  %v997_v14 = vld [vmem:[#allocation7 + $0x114] ss:$8 sps:$4 sm:$0xff]   ;;  %v978_v15 = vld [vmem:[#allocation7 + $0x50] ss:$8 sps:$4 sm:$0xff]   ;;  %v1003_v17 = vld [vmem:[#allocation7 + $0x124] ss:$8 sps:$4 sm:$0xff]  }
  0x84   : > { %588 = vmatpush1.bf16.msra.mxu1 %v966_v4  ;;  %627 = vmatpush1.bf16.msra.mxu0 %v995_v13  ;;  %v1001_v16 = vld [vmem:[#allocation7 + $0x110] ss:$8 sps:$4 sm:$0xff]   ;;  %v979_v18 = vld [vmem:[#allocation7 + $0x64] ss:$8 sps:$4 sm:$0xff]   ;;  %v1007_v19 = vld [vmem:[#allocation7 + $0x120] ss:$8 sps:$4 sm:$0xff]  }
  0x85   : > { %589 = vmatprep.subr.bf16.mxu1 %v967_v5  ;;  %628 = vmatprep.subr.bf16.mxu0 %v997_v14  ;;  %v1009_v20 = vld [vmem:[#allocation7 + $0x134] ss:$8 sps:$4 sm:$0xff]   ;;  %v981_v21 = vld [vmem:[#allocation7 + $0x60] ss:$8 sps:$4 sm:$0xff]   ;;  %v1013_v23 = vld [vmem:[#allocation7 + $0x130] ss:$8 sps:$4 sm:$0xff]  }
  0x86   : > { %v982_v22 = vld [vmem:[#allocation7 + $0x74] ss:$8 sps:$4 sm:$0xff]   ;;  %v1015_v24 = vld [vmem:[#allocation7 + $0x144] ss:$8 sps:$4 sm:$0xff]   ;;  %v984_v25 = vld [vmem:[#allocation7 + $0x70] ss:$8 sps:$4 sm:$0xff]  }
  0x87   : > { %v985_v26 = vld [vmem:[#allocation7 + $0x84] ss:$8 sps:$4 sm:$0xff]   ;;  %v1019_v27 = vld [vmem:[#allocation7 + $0x140] ss:$8 sps:$4 sm:$0xff]   ;;  %v1021_v29 = vld [vmem:[#allocation7 + $0x154] ss:$8 sps:$4 sm:$0xff]  }
  0x88   : > { %590 = vmatpush1.bf16.msra.mxu1 %v969_v6  ;;  %629 = vmatpush1.bf16.msra.mxu0 %v1001_v16  ;;  %v987_v31 = vld [vmem:[#allocation7 + $0x80] ss:$8 sps:$4 sm:$0xff]   ;;  %v988_v32 = vld [vmem:[#allocation7 + $0x94] ss:$8 sps:$4 sm:$0xff]   ;;  %v1025_v33 = vld [vmem:[#allocation7 + $0x150] ss:$8 sps:$4 sm:$0xff]  }
  0x89   : > { %591 = vmatprep.subr.bf16.mxu1 %v970_v7  ;;  %630 = vmatprep.subr.bf16.mxu0 %v1003_v17  ;;  %v301_v34 = vld [vmem:[%s1441_s5 + $0x10] sm:$0xff]  ;;  %vm581_vm0 = vcmask 785408   ;;  %v299_v49 = vld [vmem:[%s1441_s5] sm:$0xff]  ;;  %s876_s21 = smul.u32 48, %s1429_s7  ;;  %vm294_vm1 = vcmask 809984   ;;  %v352_v60 = vshrl.u32 %v351_v59, 7 }
  0x8a   : > { %v990_v35 = vld [vmem:[#allocation7 + $0x90] ss:$8 sps:$4 sm:$0xff]   ;;  %v993_v36 = vld [vmem:[#allocation7 + $0xa4] ss:$8 sps:$4 sm:$0xff]   ;;  %v304_v37 = vpack.c.bf16 %v301_v34, %v301_v34  ;;  %v996_v38 = vld [vmem:[#allocation7 + $0xa0] ss:$8 sps:$4 sm:$0xff]   ;;  %v302_v50 = vpack.c.bf16 %v299_v49, %v299_v49 }
  0x8b   : > { %v999_v39 = vld [vmem:[#allocation7 + $0xb4] ss:$8 sps:$4 sm:$0xff]   ;;  %v1002_v40 = vld [vmem:[#allocation7 + $0xb0] ss:$8 sps:$4 sm:$0xff]   ;;  %v1005_v41 = vld [vmem:[#allocation7 + $0xc4] ss:$8 sps:$4 sm:$0xff]  }
  0x8c   : > { %592 = vmatpush1.bf16.msra.mxu1 %v972_v8  ;;  %631 = vmatpush1.bf16.msra.mxu0 %v1007_v19  ;;  %v1008_v42 = vld [vmem:[#allocation7 + $0xc0] ss:$8 sps:$4 sm:$0xff]   ;;  %v1011_v43 = vld [vmem:[#allocation7 + $0xd4] ss:$8 sps:$4 sm:$0xff]   ;;  %v1014_v44 = vld [vmem:[#allocation7 + $0xd0] ss:$8 sps:$4 sm:$0xff]  }
  0x8d   : > { %593 = vmatprep.subr.bf16.mxu1 %v973_v9  ;;  %632 = vmatprep.subr.bf16.mxu0 %v1009_v20  ;;  %v1017_v45 = vld [vmem:[#allocation7 + $0xe4] ss:$8 sps:$4 sm:$0xff]   ;;  %v1020_v46 = vld [vmem:[#allocation7 + $0xe0] ss:$8 sps:$4 sm:$0xff]   ;;  %v1023_v47 = vld [vmem:[#allocation7 + $0xf4] ss:$8 sps:$4 sm:$0xff]  }
  0x8e   : > { %v1026_v48 = vld [vmem:[#allocation7 + $0xf0] ss:$8 sps:$4 sm:$0xff]   ;;  %v292_v53 = vld [vmem:[%s1433_s13 + $0x10] sm:$0xff]  ;;  %v293_v54 = vld [vmem:[%s1433_s13 + $0x18] sm:$0xff]  ;;  %s288_s23 = scalar_lea.vmem [#allocation8], %s876_s21  ;;  %v353_v61 = vsub.s32 0, %v352_v60 }
  0x8f   : > { %v290_v51 = vld [vmem:[%s1433_s13] sm:$0xff]  ;;  %v291_v52 = vld [vmem:[%s1433_s13 + $0x8] sm:$0xff]  ;;  %297 = vst.msk [vmem:[%s288_s23 + $0x10] sm:$0xff] %vm294_vm1, %v292_v53  ;;  %298 = vst.msk [vmem:[%s288_s23 + $0x18] sm:$0xff] %vm294_vm1, %v293_v54  ;;  %v357_v63 = vsub.s32 1, %v352_v60  ;;  %s686_s27 = sshll.u32 %s288_s23, 4  ;;  %s1467_s27 = int_to_ptr.vmem [resolvable:$true] %s686_s27 }
  0x90   : > { %594 = vmatpush1.bf16.msra.mxu1 %v975_v11  ;;  %633 = vmatpush1.bf16.msra.mxu0 %v1013_v23  ;;  %295 = vst.msk [vmem:[%s288_s23] sm:$0xff] %vm294_vm1, %v290_v51  ;;  %296 = vst.msk [vmem:[%s288_s23 + $0x8] sm:$0xff] %vm294_vm1, %v291_v52  ;;  %v349_v62 = vld [vmem:[%s1526_s3] sm:$0x3]  ;;  %s877_s11 = smul.u32 768, %s1197_s18  ;;  %s672_s18 = scalar_lea.sflag [#allocation4], %s1429_s7 }
  0x91   : > { %595 = vmatprep.subr.bf16.mxu1 %v976_v12  ;;  %634 = vmatprep.subr.bf16.mxu0 %v1015_v24  ;;  %v354_v0 = vrot.slane %v349_v62, %v353_v61  ;;  %v358_v1 = vrot.slane %v349_v62, %v357_v63  ;;  %s1115_s8 = scalar_lea.vmem %s1467_s27, 768  ;;  %p1556_p0 = scmp.ne.s32.totalorder %s1545_s28, 0 }
  0x92   : > { %s1472_s2 = scalar_lea.hbm %s1527_s4, %s877_s11  ;;  %p1116_p12 = scmp.ne.s32.totalorder %s1467_s27, %s1115_s8 }
  0x93   : > { %s1213_s30 = smov [#allocation8]  }
  0x94   : > { %596 = vmatpush1.bf16.msra.mxu1 %v978_v15  ;;  %635 = vmatpush1.bf16.msra.mxu0 %v1019_v27  ;;  %p1117_p5 = pnand %p1116_p12, %p1556_p0  ;;  %s1119_s14 = sshll.u32 %s1213_s30, 4  ;;  %s1120_s14 = int_to_ptr.vmem [resolvable:$false] %s1119_s14 }
  0x95   : > { %597 = vmatprep.subr.bf16.mxu1 %v979_v18  ;;  %636 = vmatprep.subr.bf16.mxu0 %v1021_v29  ;;  %s1121_s26 = scalar_lea.vmem %s1120_s14, 1536  ;;  %p1122_p1 = scmp.lt.s32.totalorder %s1467_s27, %s1120_s14 }
  0x96   : > { %p1118_p9 = pneg %p1117_p5  ;;  %p1123_p2 = scmp.lt.s32.totalorder %s1121_s26, %s1115_s8 }
  0x98   : > { %598 = vmatpush1.bf16.msra.mxu1 %v981_v21  ;;  %637 = vmatpush1.bf16.msra.mxu0 %v1025_v33  ;;  %p1124_p7 = por %p1123_p2, %p1122_p1 }
  0x99   : > { %599 = vmatprep.subr.bf16.mxu1 %v982_v22 }
  0x9a   : > { %p1125_p4 = pnand %p1124_p7, %p1118_p9 }
  0x9b   : > { %862 = vmatmul.mubr.msk.bf16.vlgmr.msra.gmra.mrb[0].mxu0 %vm581_vm0, %v304_v37 }
  0x9c   : > { %600 = vmatpush1.bf16.msra.mxu1 %v984_v25 }
  0x9d   : > { %601 = vmatprep.subr.bf16.mxu1 %v985_v26 }
  0xa0   : > { %602 = vmatpush1.bf16.msra.mxu1 %v987_v31 }
  0xa1   : > { %603 = vmatprep.subr.bf16.mxu1 %v988_v32 }
  0xa4   : > { %604 = vmatpush1.bf16.msra.mxu1 %v990_v35 }
  0xa5   : > { %605 = vmatprep.subr.bf16.mxu1 %v993_v36 }
  0xa8   : > { %606 = vmatpush1.bf16.msra.mxu1 %v996_v38 }
  0xa9   : > { %607 = vmatprep.subr.bf16.mxu1 %v999_v39 }
  0xac   : > { %608 = vmatpush1.bf16.msra.mxu1 %v1002_v40 }
  0xad   : > { %609 = vmatprep.subr.bf16.mxu1 %v1005_v41 }
  0xb0   : > { %610 = vmatpush1.bf16.msra.mxu1 %v1008_v42 }
  0xb1   : > { %611 = vmatprep.subr.bf16.mxu1 %v1011_v43 }
  0xb4   : > { %612 = vmatpush1.bf16.msra.mxu1 %v1014_v44 }
  0xb5   : > { %613 = vmatprep.subr.bf16.mxu1 %v1017_v45 }
  0xb8   : > { %614 = vmatpush1.bf16.msra.mxu1 %v1020_v46 }
  0xb9   : > { %615 = vmatprep.subr.bf16.mxu1 %v1023_v47 }
  0xbc   : > { %616 = vmatpush1.bf16.msra.mxu1 %v1026_v48 }
  0xbf   : > { %618 = vmatmul.mubr.bf16.vlgmr.msra.gmra.mrb[0].mxu1 %v302_v50 }
 0x16e   : > { %v660_v55 = vpop.f32.mrb[0].mxu0 }
 0x16f   : > { %v662_v56 = vpop.f32.mrb[1].mxu0 }
 0x170   : > { %v664_v57 = vpop.f32.mrb[2].mxu0 }
 0x171   : > { %v665_v58 = vpop.f32.mrb[3].mxu0 }
 0x192   : > { %v619_v2 = vpop.f32.mrb[0].mxu1 }
 0x193   : > { %v620_v3 = vadd.f32 %v619_v2, %v354_v0  ;;  %v621_v4 = vpop.f32.mrb[1].mxu1 }
 0x194   : > { %v622_v5 = vadd.f32 %v621_v4, %v358_v1  ;;  %v623_v6 = vpop.f32.mrb[2].mxu1 }
 0x195   : > { %v661_v7 = vadd.f32 %v660_v55, %v620_v3  ;;  %v624_v8 = vpop.f32.mrb[3].mxu1 }
 0x196   : > { %v663_v9 = vadd.f32 %v662_v56, %v622_v5 }
 0x197   : > { %863 = vst.msk [vmem:[%s288_s23 + $0x20] sm:$0xff] %vm294_vm1, %v661_v7 }
 0x198   : > { %864 = vst.msk [vmem:[%s288_s23 + $0x28] sm:$0xff] %vm294_vm1, %v663_v9 }
 0x199   : > { %1128 = shalt.err (!%p1125_p4)
}
 0x19a   : > { %s1129_s10 = scalar_lea.hbm %s1472_s2, 768  ;;  %s1133_s25 = scalar_lea.hbm %s1527_s4, 1536 }
 0x19b   : > { %p1130_p8 = scmp.ne.s32.totalorder %s1472_s2, %s1129_s10  ;;  %p1134_p10 = scmp.lt.u32.totalorder %s1472_s2, %s1527_s4 }
 0x19c   : > { %p1135_p13 = scmp.lt.u32.totalorder %s1133_s25, %s1129_s10  ;;  %p1137_p12 = scmp.lt.u32.totalorder %s1129_s10, %s1472_s2 }
 0x19d   : > { %p1131_p11 = pnand %p1130_p8, %p1556_p0 }
 0x19e   : > { %p1136_p3 = por %p1135_p13, %p1134_p10 }
 0x19f   : > { %p1132_p6 = pneg %p1131_p11 }
 0x1a0   : > { %p1138_p5 = por %p1137_p12, %p1136_p3 }
 0x1a2   : > { %p1139_p9 = pnand %p1138_p5, %p1132_p6 }
 0x1a4   : > { %1142 = shalt.err (!%p1139_p9)
}
 0x1a5   : > { %s1214_s21 = smov 128   ;;  %s1215_s23 = smov 8  }
 0x1a6   : > { %886 = dma.vmem_to_hbm [thread:$0]  (%p1556_p0), %s1467_s27, 768, %s1472_s2, %s672_s18, %s1214_s21, %s1214_s21, %s1215_s23  }
 0x1a7 PF: > { %s701_s6 = sand.u32 1, %s1185_s15   ;;  %p1557_p1 = scmp.ne.s32.totalorder %s1538_s24, 0 }
 0x1a8   : > { %p1558_p2 = scmp.ge.s32.totalorder %s1205_s20, 2  ;;  %s702_s12 = scalar_lea.sflag [#allocation4], %s701_s6 }
 0x1aa   : > { %p900_p7 = pnand %p1558_p2, %p1557_p1 }
 0x1ac   : > { %1180 = dma.done.wait (!%p900_p7), %s702_s12, 768  }
 0x1ad   : > { %1182 = vsyncadd (!%p900_p7), %s702_s12, 4294966528  ;;  %s23_s20 = sadd.s32 1, %s1205_s20   ;;  %s1559_s11 = sld [smem:[#allocation14_spill]] }
 0x1ae   : > { %p20_p4 = scmp.ge.s32.totalorder %s23_s20, 4   ;;  %s1560_s28 = sld [smem:[#allocation13_spill]] }
 0x1af   : > { %s1561_s15 = smov %s1189_s16  ;;  %s1562_s16 = smov %s1193_s17 }
 0x1b0   : > { %s1564_s18 = smov %s1201_s19  ;;  %22 = sbr.rel (!%p20_p4) target bundleno = 11 (0xb), region = 100 }
 0x1b3   : > { %s1563_s17 = smov %s1559_s11 }
 0x1b4   : > { %s1565_s19 = smov %s1560_s28 }
 0x1b7   :  { %707 = vsyncpa [#allocation3], 1 }
 0x1b8   :  { %709 = vsyncpa [#allocation3 + $0x1], 1 }
 0x1b9   :  { %710 = vsyncpa [#allocation6], 1 }
 0x1ba   :  { %712 = vsyncpa [#allocation6 + $0x1], 1 }
 0x1bb   :  { %713 = vsyncpa [#allocation4], 1 }
 0x1bc   :  { %715 = vsyncpa [#allocation4 + $0x1], 1 }

</bundles_post_ra>
